<compile_context>
chip_gen: v5e
topology: v5e:2x2
jax: 0.10.0
libtpu: 0.0.40
codegen_flags: <defaults>
</compile_context>

<pallas_src>
import jax
import jax.numpy as jnp
from jax.experimental import pallas as pl
from jax.experimental.pallas import tpu as pltpu


def agent_embedding_kernel(x_ref, w_ref, b_ref, out_ref):
    # One MXU pass per row tile: [T, PACK*2*D_in] @ [PACK*2*D_in, PACK*E] + bias.
    out_ref[...] = (jnp.dot(x_ref[...], w_ref[...],
                            preferred_element_type=jnp.float32)
                    + b_ref[...]).astype(out_ref.dtype)


def _round_up(x, m):
    return ((x + m - 1) // m) * m


def prepare_params(params):
    """One-time host-side weight fusion + lane-packing (hoisted out of forward)."""
    E = params["b_agent"].shape[0]
    w_agent_t = params["w_agent"].T                      # [2E, E]
    w_ag_l, w_ag_r = w_agent_t[:E, :], w_agent_t[E:, :]  # each [E, E]

    w_fused = jnp.concatenate([params["w_last"].T @ w_ag_l,
                               params["w_cur"].T @ w_ag_r], axis=0)   # [2*D_in, E]
    b_fused = (params["b_last"] @ w_ag_l
               + params["b_cur"] @ w_ag_r
               + params["b_agent"])                                   # [E]

    # Pack PACK logical rows per lane-row so the output last dim is 128-dense.
    pack = 128 // E if (E <= 128 and 128 % E == 0) else 1
    w_packed = jnp.kron(jnp.eye(pack, dtype=w_fused.dtype), w_fused)  # [pack*2D_in, pack*E]
    b_packed = jnp.tile(b_fused, pack).reshape(1, pack * E)           # [1, pack*E]
    return {"w": w_packed, "b": b_packed}


def agent_embedding(last_state, cur_state, prepared, *, tile_packed_rows=512):
    """last_state, cur_state: [B, M, D_in]  ->  [B, M, E]"""
    B, M, D_in = last_state.shape
    w, b = prepared["w"], prepared["b"]
    pack = w.shape[0] // (2 * D_in)
    E = w.shape[1] // pack
    Kp = w.shape[0]            # pack * 2 * D_in   (e.g. 16)
    Lp = w.shape[1]            # pack * E          (e.g. 128, lane-dense)

    N = B * M
    # Single fused input stream: concat([last, cur]) host-side -> one DMA stream.
    x_cat = jnp.concatenate([last_state.reshape(N, D_in),
                             cur_state.reshape(N, D_in)], axis=-1)    # [N, 2*D_in]

    # Pad logical rows so packed rows are a multiple of the (>=8) row tile.
    np_needed = pl.cdiv(N, pack)
    tp = min(tile_packed_rows, _round_up(np_needed, 8))   # packed-row tile, multiple of 8
    np_pad = _round_up(np_needed, tp)
    n_pad = np_pad * pack
    x_cat = jnp.pad(x_cat, ((0, n_pad - N), (0, 0)))
    x_packed = x_cat.reshape(np_pad, Kp)                  # free row-major reshape

    grid = (np_pad // tp,)
    out = pl.pallas_call(
        agent_embedding_kernel,
        out_shape=jax.ShapeDtypeStruct((np_pad, Lp), last_state.dtype),
        grid=grid,
        in_specs=[
            pl.BlockSpec((tp, Kp), lambda i: (i, 0)),     # activations: tiled over rows
            pl.BlockSpec((Kp, Lp), lambda i: (0, 0)),     # fused weight: VMEM-resident
            pl.BlockSpec((1, Lp), lambda i: (0, 0)),      # fused bias:   VMEM-resident
        ],
        out_specs=pl.BlockSpec((tp, Lp), lambda i: (i, 0)),
        compiler_params=pltpu.CompilerParams(
            dimension_semantics=("parallel",)),
        cost_estimate=pl.CostEstimate(
            flops=2 * np_pad * Kp * Lp,
            transcendentals=0,
            bytes_accessed=4 * (np_pad * Kp + Kp * Lp + Lp + np_pad * Lp)),
    )(x_packed, w, b)

    # [np_pad, pack*E] has the same row-major layout as [np_pad*pack, E].
    return out.reshape(n_pad, E)[:N].reshape(B, M, E)


def init_params(key, input_dim, embed_dim):
    ks = jax.random.split(key, 6)

    def lin(kw, kb, fan_in, fan_out):
        bound = 1.0 / jnp.sqrt(fan_in)
        w = jax.random.uniform(kw, (fan_out, fan_in), jnp.float32, -bound, bound)
        b = jax.random.uniform(kb, (fan_out,), jnp.float32, -bound, bound)
        return w, b

    w_last, b_last = lin(ks[0], ks[1], input_dim, embed_dim)
    w_cur, b_cur = lin(ks[2], ks[3], input_dim, embed_dim)
    w_agent, b_agent = lin(ks[4], ks[5], 2 * embed_dim, embed_dim)
    return dict(w_last=w_last, b_last=b_last,
                w_cur=w_cur, b_cur=b_cur,
                w_agent=w_agent, b_agent=b_agent)


def reference(last_state, cur_state, params):
    last_e = last_state @ params["w_last"].T + params["b_last"]
    cur_e = cur_state @ params["w_cur"].T + params["b_cur"]
    city = jnp.concatenate([last_e, cur_e], axis=-1)
    return city @ params["w_agent"].T + params["b_agent"]


if __name__ == "__main__":
    B, M = 2, 8
    input_dim, hidden_dim, embed_dim = 2, 32, 32  # hidden_dim unused by forward

    key = jax.random.PRNGKey(0)
    kp, k1, k2 = jax.random.split(key, 3)
    params = init_params(kp, input_dim, embed_dim)
    prepared = prepare_params(params)             # one-time weight fusion/packing

    # agent_state_list = [last_city_state, cur_city_state], each [B, M, 2]
    last_state = jax.random.normal(k1, (B, M, input_dim), jnp.float32)
    cur_state = jax.random.normal(k2, (B, M, input_dim), jnp.float32)

    fwd = jax.jit(agent_embedding)
    out = jax.block_until_ready(fwd(last_state, cur_state, prepared))

    ref = reference(last_state, cur_state, params)
    assert out.shape == (B, M, embed_dim)
    assert jnp.allclose(out, ref, atol=1e-4, rtol=1e-4), "mismatch vs reference"
    print("KERNEL_OK")
</pallas_src>

<mosaic_0001>
module attributes {stable_mosaic.version = 11 : i64} {
  func.func @agent_embedding_kernel(%arg0: i32, %arg1: memref<8x16xf32, #tpu.memory_space<vmem>>, %arg2: memref<16x128xf32, #tpu.memory_space<vmem>>, %arg3: memref<1x128xf32, #tpu.memory_space<vmem>>, %arg4: memref<8x128xf32, #tpu.memory_space<vmem>>) attributes {dimension_semantics = [#tpu.dimension_semantics<parallel>], iteration_bounds = array<i64: 1>, scalar_prefetch = 0 : i64, scratch_operands = 0 : i64, tpu.core_type = #tpu.core_type<tc>, window_params = [{transform_indices = @transform_0, window_bounds = array<i64: 8, 16>}, {pipeline_mode = #tpu.pipeline_mode<synchronous>, transform_indices = @transform_1, window_bounds = array<i64: 16, 128>}, {pipeline_mode = #tpu.pipeline_mode<synchronous>, transform_indices = @transform_2, window_bounds = array<i64: 1, 128>}, {transform_indices = @transform_3, window_bounds = array<i64: 8, 128>}]} {
    %c0 = arith.constant 0 : index
    %c0_0 = arith.constant 0 : index
    %0 = vector.load %arg1[%c0, %c0_0] : memref<8x16xf32, #tpu.memory_space<vmem>>, vector<8x16xf32>
    %c0_1 = arith.constant 0 : index
    %c0_2 = arith.constant 0 : index
    %1 = vector.load %arg2[%c0_1, %c0_2] : memref<16x128xf32, #tpu.memory_space<vmem>>, vector<16x128xf32>
    %cst = arith.constant dense<0.000000e+00> : vector<8x128xf32>
    %2 = tpu.matmul %0, %1, %cst {dimension_numbers = #tpu.dot_dimension_numbers<[1], [0], [0], [1], [0, 0, 1, 1], [], []>} : vector<8x16xf32>, vector<16x128xf32>, vector<8x128xf32> -> vector<8x128xf32>
    %c0_3 = arith.constant 0 : index
    %c0_4 = arith.constant 0 : index
    %3 = vector.load %arg3[%c0_3, %c0_4] : memref<1x128xf32, #tpu.memory_space<vmem>>, vector<1x128xf32>
    %4 = vector.broadcast %3 : vector<1x128xf32> to vector<8x128xf32>
    %5 = arith.addf %2, %4 : vector<8x128xf32>
    %c0_5 = arith.constant 0 : index
    %c0_6 = arith.constant 0 : index
    %6 = vector.load %arg4[%c0_5, %c0_6] : memref<8x128xf32, #tpu.memory_space<vmem>>, vector<8x128xf32>
    tpu.vector_store %arg4[%c0_5, %c0_6], %5 {strides = array<i32>} : memref<8x128xf32, #tpu.memory_space<vmem>>, vector<8x128xf32>,
    return
  }
  func.func @transform_0(%arg0: i32) -> (i32, i32) {
    %c0_i32 = arith.constant 0 : i32
    %c0_i32_0 = arith.constant 0 : i32
    return %arg0, %c0_i32 : i32, i32
  }
  func.func @transform_1(%arg0: i32) -> (i32, i32) {
    %c0_i32 = arith.constant 0 : i32
    %c0_i32_0 = arith.constant 0 : i32
    %c0_i32_1 = arith.constant 0 : i32
    return %c0_i32, %c0_i32_0 : i32, i32
  }
  func.func @transform_2(%arg0: i32) -> (i32, i32) {
    %c0_i32 = arith.constant 0 : i32
    %c0_i32_0 = arith.constant 0 : i32
    %c0_i32_1 = arith.constant 0 : i32
    return %c0_i32, %c0_i32_0 : i32, i32
  }
  func.func @transform_3(%arg0: i32) -> (i32, i32) {
    %c0_i32 = arith.constant 0 : i32
    %c0_i32_0 = arith.constant 0 : i32
    return %arg0, %c0_i32 : i32, i32
  }
}

</mosaic_0001>

<bundles_post_ra>
// kernel: agent_embedding.1
= control target key start
LH: loop header
LB: loop body
LE: loop exit
PB: predicated region body
PF: predicated region fallthrough
CT: control target
= control target key end

     0   :  { %vm21_vm0 = vcmask 130048   ;;  %s87_s1 = inlined_call_operand.vmem [shape: f32[16,128], index: 1, kind: input, shape index: {}]   ;;  %s88_s0 = inlined_call_operand.vmem [shape: f32[8,16], index: 0, kind: input, shape index: {}]   ;;  %s89_s2 = inlined_call_operand.vmem [shape: f32[1,128], index: 2, kind: input, shape index: {}]   ;;  %s90_s3 = inlined_call_operand.vmem [shape: f32[8,128], index: 3, kind: output, shape index: {}]  }
   0x1   :  { %v16_v0 = vld [vmem:[%s87_s1 + $0x8] sm:$0xff]  ;;  %v15_v1 = vld [vmem:[%s87_s1] sm:$0xff] }
   0x2   :  { %39 = vmatpush.msra.mxu0 %v16_v0  ;;  %v14_v2 = vld [vmem:[%s88_s0] sm:$0xff] }
   0x3   :  { %v51_v3 = vld [vmem:[%s89_s2] ss:$0 sm:$0xff] }
   0x4   :  { %40 = vmatpush.msra.mxu0 %v15_v1 }
   0x5   :  { %50 = vmatmul.msk.f32.vlgmr.msra.gmra.mxu0 %vm21_vm0, %v14_v2 }
  0x82   :  { %v42_v4 = vpop.f32.mrf.mxu0 }
  0x83   :  { %v43_v5 = vadd.f32 %v51_v3, %v42_v4 }
  0x85   :  { %45 = vst [vmem:[%s90_s3] sm:$0xff] %v43_v5 }

</bundles_post_ra>
